<compile_context>
chip_gen: v6e
topology: v6e:2x2x1
jax: 0.10.0
libtpu: 0.0.40
codegen_flags: <defaults>
</compile_context>

<pallas_src>
import functools

import jax
import jax.numpy as jnp
import numpy as np
from jax.experimental import pallas as pl
from jax.experimental.pallas import tpu as pltpu


def io_b_kernel(x_ref, starter_ref, adj_ref,
                w1x_ref, w1s_ref, b1_ref,
                w2_ref, b2_ref,
                w3_ref, b3_ref,
                w4_ref, b4_ref,
                w5s_ref, w5y_ref, b5_ref,
                out_ref, sbias_ref, acc_ref):
    t = pl.program_id(1)                       # node-tile (reduction) axis

    @pl.when(t == 0)
    def _():
        # Hoisted starter contribution of the n2e layer (computed once per batch).
        sbias_ref[...] = (
            jnp.dot(starter_ref[...], w1s_ref[...],
                    preferred_element_type=jnp.float32)
            + b1_ref[...])                                            # (1, hid)
        acc_ref[...] = jnp.zeros_like(acc_ref)

    x_tile = x_ref[...]                                               # (TN, dim)

    # edge MLP: relu(n2e) -> relu(e2e).  Matmuls may be bf16; bias/ReLU in f32.
    h = jnp.dot(x_tile, w1x_ref[...], preferred_element_type=jnp.float32)
    h = jnp.maximum(h + sbias_ref[...], 0.0)                          # (TN, hid)
    h = jnp.dot(h.astype(w2_ref.dtype), w2_ref[...],
                preferred_element_type=jnp.float32) + b2_ref[...]
    h = jnp.maximum(h, 0.0)                                           # (TN, hid)

    # adjacency-weighted reduction over the node tile as a matvec on the MXU:
    #   acc += adj_row (1,TN) @ h (TN,hid)
    acc_ref[...] += jnp.dot(adj_ref[...], h, preferred_element_type=jnp.float32)

    @pl.when(t == pl.num_programs(1) - 1)
    def _():
        s = acc_ref[...]                                              # (1, hid)
        y = jnp.dot(s, w3_ref[...], preferred_element_type=jnp.float32) + b3_ref[...]
        y = jnp.maximum(y, 0.0)
        y = jnp.dot(y, w4_ref[...], preferred_element_type=jnp.float32) + b4_ref[...]
        y = jnp.maximum(y, 0.0)
        # output = concat(starter, y) @ w_out + b  ==  starter@w5_s + y@w5_y + b
        out = (jnp.dot(starter_ref[...], w5s_ref[...],
                       preferred_element_type=jnp.float32)
               + jnp.dot(y, w5y_ref[...], preferred_element_type=jnp.float32)
               + b5_ref[...])
        out_ref[...] = out.astype(out_ref.dtype)


@functools.partial(jax.jit, static_argnames=("i", "node_tile", "compute_dtype"))
def io_b_forward(x, adj_col, params, *, i, node_tile=None,
                 compute_dtype=jnp.float32):
    B, N, dim = x.shape
    hid = params["w_n2e"].shape[1]
    if node_tile is None:
        node_tile = N
    assert N % node_tile == 0, "node count must be divisible by node_tile"
    num_tiles = N // node_tile

    # ---- host-side glue / parameter prep (one-time) ----
    starter = x[:, i, :].reshape(B, 1, dim)                 # stays f32
    adj3 = adj_col.reshape(num_tiles, 1, node_tile)         # lane-dense adj rows

    w1x = params["w_n2e"][:dim].astype(compute_dtype)       # n2e, x half
    w1s = params["w_n2e"][dim:]                             # n2e, starter half (f32)
    w2 = params["w_e2e"].astype(compute_dtype)
    w3, w4 = params["w_e2n"], params["w_n2n"]
    w5s = params["w_out"][:dim]                             # output, starter half
    w5y = params["w_out"][dim:]                             # output, y half
    b1 = params["b_n2e"].reshape(1, hid)                    # lane-major biases
    b2 = params["b_e2e"].reshape(1, hid)
    b3 = params["b_e2n"].reshape(1, hid)
    b4 = params["b_n2n"].reshape(1, hid)
    b5 = params["b_out"].reshape(1, dim)

    x_c = x.astype(compute_dtype)

    # ---- VMEM budget: only raise the scoped limit if the working set needs it ----
    itemsize = jnp.dtype(compute_dtype).itemsize
    weight_bytes = 4 * (2 * dim * hid + 3 * hid * hid + (dim + hid) * dim
                        + 4 * hid + dim)
    stream_bytes = node_tile * dim * itemsize + node_tile * 4 + dim * 4
    est_bytes = 2 * (stream_bytes + weight_bytes) + 8 * hid  # double buffers + scratch
    vmem_limit = None
    if est_bytes > 24 * 1024 * 1024:
        vmem_limit = min(int(est_bytes * 3 // 2), 96 * 1024 * 1024)

    const3 = lambda b, t: (0, 0)

    grid_spec = pltpu.PrefetchScalarGridSpec(
        num_scalar_prefetch=0,
        grid=(B, num_tiles),
        in_specs=[
            pl.BlockSpec((None, node_tile, dim), lambda b, t: (b, t, 0)),  # x tile
            pl.BlockSpec((None, 1, dim), lambda b, t: (b, 0, 0)),          # starter
            pl.BlockSpec((None, 1, node_tile), lambda b, t: (t, 0, 0)),    # adj row
            pl.BlockSpec((dim, hid), const3),                              # w1_x
            pl.BlockSpec((dim, hid), const3),                              # w1_s
            pl.BlockSpec((1, hid), const3),                                # b1
            pl.BlockSpec((hid, hid), const3),                              # e2e W
            pl.BlockSpec((1, hid), const3),                                # e2e b
            pl.BlockSpec((hid, hid), const3),                              # e2n W
            pl.BlockSpec((1, hid), const3),                                # e2n b
            pl.BlockSpec((hid, hid), const3),                              # n2n W
            pl.BlockSpec((1, hid), const3),                                # n2n b
            pl.BlockSpec((dim, dim), const3),                              # w5_s
            pl.BlockSpec((hid, dim), const3),                              # w5_y
            pl.BlockSpec((1, dim), const3),                                # b5
        ],
        out_specs=pl.BlockSpec((None, 1, dim), lambda b, t: (b, 0, 0)),
        scratch_shapes=[pltpu.VMEM((1, hid), jnp.float32),   # hoisted starter bias
                        pltpu.VMEM((1, hid), jnp.float32)],  # node-sum accumulator
    )

    out = pl.pallas_call(
        io_b_kernel,
        out_shape=jax.ShapeDtypeStruct((B, 1, dim), jnp.float32),
        grid_spec=grid_spec,
        compiler_params=pltpu.CompilerParams(
            dimension_semantics=("parallel", "arbitrary"),
            vmem_limit_bytes=vmem_limit),
    )(x_c, starter, adj3,
      w1x, w1s, b1, w2, b2, w3, b3, w4, b4, w5s, w5y, b5)
    return out.reshape(B, dim)


def ref_forward(x, adj_col, i, params):
    """Pure-JAX reference reproducing the PyTorch forward (chunking is a no-op)."""
    starter = x[:, i, :]
    ender = jnp.broadcast_to(starter[:, None, :], x.shape)
    c = jnp.concatenate([x, ender], axis=2)
    h = jax.nn.relu(c @ params["w_n2e"] + params["b_n2e"])
    h = jax.nn.relu(h @ params["w_e2e"] + params["b_e2e"])
    h = h * adj_col[None, :, None]
    s = jnp.sum(h, axis=1)
    y = jax.nn.relu(s @ params["w_e2n"] + params["b_e2n"])
    y = jax.nn.relu(y @ params["w_n2n"] + params["b_n2n"])
    cat = jnp.concatenate([starter, y], axis=-1)
    return cat @ params["w_out"] + params["b_out"]


def init_params(key, dim, hid):
    """Deterministic init (uniform, like nn.Linear's fan_in bound). W stored (in, out)."""
    def linear(k, fan_in, fan_out):
        kw, kb = jax.random.split(k)
        bound = 1.0 / np.sqrt(fan_in)
        w = jax.random.uniform(kw, (fan_in, fan_out), jnp.float32, -bound, bound)
        b = jax.random.uniform(kb, (fan_out,), jnp.float32, -bound, bound)
        return w, b

    ks = jax.random.split(key, 5)
    p = {}
    p["w_n2e"], p["b_n2e"] = linear(ks[0], 2 * dim, hid)
    p["w_e2e"], p["b_e2e"] = linear(ks[1], hid, hid)
    p["w_e2n"], p["b_e2n"] = linear(ks[2], hid, hid)
    p["w_n2n"], p["b_n2n"] = linear(ks[3], hid, hid)
    p["w_out"], p["b_out"] = linear(ks[4], dim + hid, dim)
    return p


if __name__ == "__main__":
    B, N, dim, hid = 2, 16, 4, 32
    i = 3

    key = jax.random.PRNGKey(0)
    kx, ka, kp = jax.random.split(key, 3)
    x = jax.random.normal(kx, (B, N, dim), jnp.float32)
    adj_col = (jax.random.uniform(ka, (N,)) > 0.5).astype(jnp.float32)
    params = init_params(kp, dim, hid)

    expected = ref_forward(x, adj_col, i, params)

    # 1) single node step (toy N=16 fits one tile), f32
    out = jax.block_until_ready(io_b_forward(x, adj_col, params, i=i, node_tile=N))
    np.testing.assert_allclose(np.asarray(out), np.asarray(expected),
                               rtol=1e-5, atol=1e-5)

    # 2) tiled node reduction path (exercises the VMEM accumulator), f32
    out_tiled = jax.block_until_ready(
        io_b_forward(x, adj_col, params, i=i, node_tile=8))
    np.testing.assert_allclose(np.asarray(out_tiled), np.asarray(expected),
                               rtol=1e-5, atol=1e-5)

    # 3) bf16-streamed x / edge-MLP weights (v6e MXU + HBM path), f32 accumulation
    out_bf16 = jax.block_until_ready(
        io_b_forward(x, adj_col, params, i=i, node_tile=N,
                     compute_dtype=jnp.bfloat16))
    np.testing.assert_allclose(np.asarray(out_bf16), np.asarray(expected),
                               rtol=3e-2, atol=3e-2)

    print("KERNEL_OK")
</pallas_src>

<mosaic_0001>
module attributes {stable_mosaic.version = 11 : i64} {
  func.func @io_b_kernel(%arg0: i32, %arg1: i32, %arg2: memref<1x16x4xf32, #tpu.memory_space<vmem>>, %arg3: memref<1x1x4xf32, #tpu.memory_space<vmem>>, %arg4: memref<1x1x16xf32, #tpu.memory_space<vmem>>, %arg5: memref<4x32xf32, #tpu.memory_space<vmem>>, %arg6: memref<4x32xf32, #tpu.memory_space<vmem>>, %arg7: memref<1x32xf32, #tpu.memory_space<vmem>>, %arg8: memref<32x32xf32, #tpu.memory_space<vmem>>, %arg9: memref<1x32xf32, #tpu.memory_space<vmem>>, %arg10: memref<32x32xf32, #tpu.memory_space<vmem>>, %arg11: memref<1x32xf32, #tpu.memory_space<vmem>>, %arg12: memref<32x32xf32, #tpu.memory_space<vmem>>, %arg13: memref<1x32xf32, #tpu.memory_space<vmem>>, %arg14: memref<4x4xf32, #tpu.memory_space<vmem>>, %arg15: memref<32x4xf32, #tpu.memory_space<vmem>>, %arg16: memref<1x4xf32, #tpu.memory_space<vmem>>, %arg17: memref<1x1x4xf32, #tpu.memory_space<vmem>>, %arg18: memref<1x32xf32, #tpu.memory_space<vmem>>, %arg19: memref<1x32xf32, #tpu.memory_space<vmem>>) attributes {dimension_semantics = [#tpu.dimension_semantics<parallel>, #tpu.dimension_semantics<arbitrary>], iteration_bounds = array<i64: 2, 1>, scalar_prefetch = 0 : i64, scratch_operands = 2 : i64, tpu.core_type = #tpu.core_type<tc>, window_params = [{transform_indices = @transform_0, window_bounds = array<i64: 1, 16, 4>}, {transform_indices = @transform_1, window_bounds = array<i64: 1, 1, 4>}, {transform_indices = @transform_2, window_bounds = array<i64: 1, 1, 16>}, {pipeline_mode = #tpu.pipeline_mode<synchronous>, transform_indices = @transform_3, window_bounds = array<i64: 4, 32>}, {pipeline_mode = #tpu.pipeline_mode<synchronous>, transform_indices = @transform_4, window_bounds = array<i64: 4, 32>}, {pipeline_mode = #tpu.pipeline_mode<synchronous>, transform_indices = @transform_5, window_bounds = array<i64: 1, 32>}, {pipeline_mode = #tpu.pipeline_mode<synchronous>, transform_indices = @transform_6, window_bounds = array<i64: 32, 32>}, {pipeline_mode = #tpu.pipeline_mode<synchronous>, transform_indices = @transform_7, window_bounds = array<i64: 1, 32>}, {pipeline_mode = #tpu.pipeline_mode<synchronous>, transform_indices = @transform_8, window_bounds = array<i64: 32, 32>}, {pipeline_mode = #tpu.pipeline_mode<synchronous>, transform_indices = @transform_9, window_bounds = array<i64: 1, 32>}, {pipeline_mode = #tpu.pipeline_mode<synchronous>, transform_indices = @transform_10, window_bounds = array<i64: 32, 32>}, {pipeline_mode = #tpu.pipeline_mode<synchronous>, transform_indices = @transform_11, window_bounds = array<i64: 1, 32>}, {pipeline_mode = #tpu.pipeline_mode<synchronous>, transform_indices = @transform_12, window_bounds = array<i64: 4, 4>}, {pipeline_mode = #tpu.pipeline_mode<synchronous>, transform_indices = @transform_13, window_bounds = array<i64: 32, 4>}, {pipeline_mode = #tpu.pipeline_mode<synchronous>, transform_indices = @transform_14, window_bounds = array<i64: 1, 4>}, {transform_indices = @transform_15, window_bounds = array<i64: 1, 1, 4>}]} {
    %c0_i32 = arith.constant 0 : i32
    %0 = arith.cmpi eq, %arg1, %c0_i32 : i32
    %1 = arith.extui %0 : i1 to i32
    %c0_i32_0 = arith.constant 0 : i32
    %2 = arith.cmpi ne, %1, %c0_i32_0 : i32
    scf.if %2 {
      %c0_24 = arith.constant 0 : index
      %c0_25 = arith.constant 0 : index
      %c0_26 = arith.constant 0 : index
      %28 = vector.load %arg3[%c0_24, %c0_25, %c0_26] : memref<1x1x4xf32, #tpu.memory_space<vmem>>, vector<1x1x4xf32>
      %29 = vector.shape_cast %28 : vector<1x1x4xf32> to vector<1x4xf32>
      %c0_27 = arith.constant 0 : index
      %c0_28 = arith.constant 0 : index
      %30 = vector.load %arg6[%c0_27, %c0_28] : memref<4x32xf32, #tpu.memory_space<vmem>>, vector<4x32xf32>
      %cst_29 = arith.constant dense<0.000000e+00> : vector<1x32xf32>
      %31 = tpu.matmul %29, %30, %cst_29 {dimension_numbers = #tpu.dot_dimension_numbers<[1], [0], [0], [1], [0, 0, 1, 1], [], []>} : vector<1x4xf32>, vector<4x32xf32>, vector<1x32xf32> -> vector<1x32xf32>
      %c0_30 = arith.constant 0 : index
      %c0_31 = arith.constant 0 : index
      %32 = vector.load %arg7[%c0_30, %c0_31] : memref<1x32xf32, #tpu.memory_space<vmem>>, vector<1x32xf32>
      %33 = arith.addf %31, %32 : vector<1x32xf32>
      %c0_32 = arith.constant 0 : index
      %c0_33 = arith.constant 0 : index
      %34 = vector.load %arg18[%c0_32, %c0_33] : memref<1x32xf32, #tpu.memory_space<vmem>>, vector<1x32xf32>
      tpu.vector_store %arg18[%c0_32, %c0_33], %33 {strides = array<i32>} : memref<1x32xf32, #tpu.memory_space<vmem>>, vector<1x32xf32>,
      %cst_34 = arith.constant 0.000000e+00 : f32
      %35 = vector.broadcast %cst_34 : f32 to vector<1x32xf32>
      %c0_35 = arith.constant 0 : index
      %c0_36 = arith.constant 0 : index
      %36 = vector.load %arg19[%c0_35, %c0_36] : memref<1x32xf32, #tpu.memory_space<vmem>>, vector<1x32xf32>
      tpu.vector_store %arg19[%c0_35, %c0_36], %35 {strides = array<i32>} : memref<1x32xf32, #tpu.memory_space<vmem>>, vector<1x32xf32>,
    } else {
    }
    %c0 = arith.constant 0 : index
    %c0_1 = arith.constant 0 : index
    %c0_2 = arith.constant 0 : index
    %3 = vector.load %arg2[%c0, %c0_1, %c0_2] : memref<1x16x4xf32, #tpu.memory_space<vmem>>, vector<1x16x4xf32>
    %4 = vector.shape_cast %3 : vector<1x16x4xf32> to vector<16x4xf32>
    %c0_3 = arith.constant 0 : index
    %c0_4 = arith.constant 0 : index
    %5 = vector.load %arg5[%c0_3, %c0_4] : memref<4x32xf32, #tpu.memory_space<vmem>>, vector<4x32xf32>
    %cst = arith.constant dense<0.000000e+00> : vector<16x32xf32>
    %6 = tpu.matmul %4, %5, %cst {dimension_numbers = #tpu.dot_dimension_numbers<[1], [0], [0], [1], [0, 0, 1, 1], [], []>} : vector<16x4xf32>, vector<4x32xf32>, vector<16x32xf32> -> vector<16x32xf32>
    %c0_5 = arith.constant 0 : index
    %c0_6 = arith.constant 0 : index
    %7 = vector.load %arg18[%c0_5, %c0_6] : memref<1x32xf32, #tpu.memory_space<vmem>>, vector<1x32xf32>
    %8 = vector.broadcast %7 : vector<1x32xf32> to vector<16x32xf32>
    %9 = arith.addf %6, %8 : vector<16x32xf32>
    %cst_7 = arith.constant 0.000000e+00 : f32
    %10 = vector.broadcast %cst_7 : f32 to vector<16x32xf32>
    %11 = arith.maximumf %9, %10 : vector<16x32xf32>
    %c0_8 = arith.constant 0 : index
    %c0_9 = arith.constant 0 : index
    %12 = vector.load %arg8[%c0_8, %c0_9] : memref<32x32xf32, #tpu.memory_space<vmem>>, vector<32x32xf32>
    %cst_10 = arith.constant dense<0.000000e+00> : vector<16x32xf32>
    %13 = tpu.matmul %11, %12, %cst_10 {dimension_numbers = #tpu.dot_dimension_numbers<[1], [0], [0], [1], [0, 0, 1, 1], [], []>} : vector<16x32xf32>, vector<32x32xf32>, vector<16x32xf32> -> vector<16x32xf32>
    %c0_11 = arith.constant 0 : index
    %c0_12 = arith.constant 0 : index
    %14 = vector.load %arg9[%c0_11, %c0_12] : memref<1x32xf32, #tpu.memory_space<vmem>>, vector<1x32xf32>
    %15 = vector.broadcast %14 : vector<1x32xf32> to vector<16x32xf32>
    %16 = arith.addf %13, %15 : vector<16x32xf32>
    %cst_13 = arith.constant 0.000000e+00 : f32
    %17 = vector.broadcast %cst_13 : f32 to vector<16x32xf32>
    %18 = arith.maximumf %16, %17 : vector<16x32xf32>
    %c0_14 = arith.constant 0 : index
    %c0_15 = arith.constant 0 : index
    %19 = vector.load %arg19[%c0_14, %c0_15] : memref<1x32xf32, #tpu.memory_space<vmem>>, vector<1x32xf32>
    %c0_16 = arith.constant 0 : index
    %c0_17 = arith.constant 0 : index
    %c0_18 = arith.constant 0 : index
    %20 = vector.load %arg4[%c0_16, %c0_17, %c0_18] : memref<1x1x16xf32, #tpu.memory_space<vmem>>, vector<1x1x16xf32>
    %21 = vector.shape_cast %20 : vector<1x1x16xf32> to vector<1x16xf32>
    %cst_19 = arith.constant dense<0.000000e+00> : vector<1x32xf32>
    %22 = tpu.matmul %21, %18, %cst_19 {dimension_numbers = #tpu.dot_dimension_numbers<[1], [0], [0], [1], [0, 0, 1, 1], [], []>} : vector<1x16xf32>, vector<16x32xf32>, vector<1x32xf32> -> vector<1x32xf32>
    %23 = arith.addf %19, %22 : vector<1x32xf32>
    %c0_20 = arith.constant 0 : index
    %c0_21 = arith.constant 0 : index
    %24 = vector.load %arg19[%c0_20, %c0_21] : memref<1x32xf32, #tpu.memory_space<vmem>>, vector<1x32xf32>
    tpu.vector_store %arg19[%c0_20, %c0_21], %23 {strides = array<i32>} : memref<1x32xf32, #tpu.memory_space<vmem>>, vector<1x32xf32>,
    %c0_i32_22 = arith.constant 0 : i32
    %25 = arith.cmpi eq, %arg1, %c0_i32_22 : i32
    %26 = arith.extui %25 : i1 to i32
    %c0_i32_23 = arith.constant 0 : i32
    %27 = arith.cmpi ne, %26, %c0_i32_23 : i32
    scf.if %27 {
      %c0_24 = arith.constant 0 : index
      %c0_25 = arith.constant 0 : index
      %28 = vector.load %arg19[%c0_24, %c0_25] : memref<1x32xf32, #tpu.memory_space<vmem>>, vector<1x32xf32>
      %c0_26 = arith.constant 0 : index
      %c0_27 = arith.constant 0 : index
      %29 = vector.load %arg10[%c0_26, %c0_27] : memref<32x32xf32, #tpu.memory_space<vmem>>, vector<32x32xf32>
      %cst_28 = arith.constant dense<0.000000e+00> : vector<1x32xf32>
      %30 = tpu.matmul %28, %29, %cst_28 {dimension_numbers = #tpu.dot_dimension_numbers<[1], [0], [0], [1], [0, 0, 1, 1], [], []>} : vector<1x32xf32>, vector<32x32xf32>, vector<1x32xf32> -> vector<1x32xf32>
      %c0_29 = arith.constant 0 : index
      %c0_30 = arith.constant 0 : index
      %31 = vector.load %arg11[%c0_29, %c0_30] : memref<1x32xf32, #tpu.memory_space<vmem>>, vector<1x32xf32>
      %32 = arith.addf %30, %31 : vector<1x32xf32>
      %cst_31 = arith.constant 0.000000e+00 : f32
      %33 = vector.broadcast %cst_31 : f32 to vector<1x32xf32>
      %34 = arith.maximumf %32, %33 : vector<1x32xf32>
      %c0_32 = arith.constant 0 : index
      %c0_33 = arith.constant 0 : index
      %35 = vector.load %arg12[%c0_32, %c0_33] : memref<32x32xf32, #tpu.memory_space<vmem>>, vector<32x32xf32>
      %cst_34 = arith.constant dense<0.000000e+00> : vector<1x32xf32>
      %36 = tpu.matmul %34, %35, %cst_34 {dimension_numbers = #tpu.dot_dimension_numbers<[1], [0], [0], [1], [0, 0, 1, 1], [], []>} : vector<1x32xf32>, vector<32x32xf32>, vector<1x32xf32> -> vector<1x32xf32>
      %c0_35 = arith.constant 0 : index
      %c0_36 = arith.constant 0 : index
      %37 = vector.load %arg13[%c0_35, %c0_36] : memref<1x32xf32, #tpu.memory_space<vmem>>, vector<1x32xf32>
      %38 = arith.addf %36, %37 : vector<1x32xf32>
      %cst_37 = arith.constant 0.000000e+00 : f32
      %39 = vector.broadcast %cst_37 : f32 to vector<1x32xf32>
      %40 = arith.maximumf %38, %39 : vector<1x32xf32>
      %c0_38 = arith.constant 0 : index
      %c0_39 = arith.constant 0 : index
      %c0_40 = arith.constant 0 : index
      %41 = vector.load %arg3[%c0_38, %c0_39, %c0_40] : memref<1x1x4xf32, #tpu.memory_space<vmem>>, vector<1x1x4xf32>
      %42 = vector.shape_cast %41 : vector<1x1x4xf32> to vector<1x4xf32>
      %c0_41 = arith.constant 0 : index
      %c0_42 = arith.constant 0 : index
      %43 = vector.load %arg14[%c0_41, %c0_42] : memref<4x4xf32, #tpu.memory_space<vmem>>, vector<4x4xf32>
      %cst_43 = arith.constant dense<0.000000e+00> : vector<1x4xf32>
      %44 = tpu.matmul %42, %43, %cst_43 {dimension_numbers = #tpu.dot_dimension_numbers<[1], [0], [0], [1], [0, 0, 1, 1], [], []>} : vector<1x4xf32>, vector<4x4xf32>, vector<1x4xf32> -> vector<1x4xf32>
      %c0_44 = arith.constant 0 : index
      %c0_45 = arith.constant 0 : index
      %45 = vector.load %arg15[%c0_44, %c0_45] : memref<32x4xf32, #tpu.memory_space<vmem>>, vector<32x4xf32>
      %cst_46 = arith.constant dense<0.000000e+00> : vector<1x4xf32>
      %46 = tpu.matmul %40, %45, %cst_46 {dimension_numbers = #tpu.dot_dimension_numbers<[1], [0], [0], [1], [0, 0, 1, 1], [], []>} : vector<1x32xf32>, vector<32x4xf32>, vector<1x4xf32> -> vector<1x4xf32>
      %47 = arith.addf %44, %46 : vector<1x4xf32>
      %c0_47 = arith.constant 0 : index
      %c0_48 = arith.constant 0 : index
      %48 = vector.load %arg16[%c0_47, %c0_48] : memref<1x4xf32, #tpu.memory_space<vmem>>, vector<1x4xf32>
      %49 = arith.addf %47, %48 : vector<1x4xf32>
      %c0_49 = arith.constant 0 : index
      %c0_50 = arith.constant 0 : index
      %c0_51 = arith.constant 0 : index
      %50 = vector.load %arg17[%c0_49, %c0_50, %c0_51] : memref<1x1x4xf32, #tpu.memory_space<vmem>>, vector<1x1x4xf32>
      %51 = vector.shape_cast %50 : vector<1x1x4xf32> to vector<1x4xf32>
      %52 = vector.shape_cast %49 : vector<1x4xf32> to vector<1x1x4xf32>
      tpu.vector_store %arg17[%c0_49, %c0_50, %c0_51], %52 {strides = array<i32>} : memref<1x1x4xf32, #tpu.memory_space<vmem>>, vector<1x1x4xf32>,
    } else {
    }
    return
  }
  func.func @transform_0(%arg0: i32, %arg1: i32) -> (i32, i32, i32) {
    %c0_i32 = arith.constant 0 : i32
    %c0_i32_0 = arith.constant 0 : i32
    return %arg0, %arg1, %c0_i32 : i32, i32, i32
  }
  func.func @transform_1(%arg0: i32, %arg1: i32) -> (i32, i32, i32) {
    %c0_i32 = arith.constant 0 : i32
    %c0_i32_0 = arith.constant 0 : i32
    %c0_i32_1 = arith.constant 0 : i32
    return %arg0, %c0_i32, %c0_i32_0 : i32, i32, i32
  }
  func.func @transform_2(%arg0: i32, %arg1: i32) -> (i32, i32, i32) {
    %c0_i32 = arith.constant 0 : i32
    %c0_i32_0 = arith.constant 0 : i32
    %c0_i32_1 = arith.constant 0 : i32
    return %arg1, %c0_i32, %c0_i32_0 : i32, i32, i32
  }
  func.func @transform_3(%arg0: i32, %arg1: i32) -> (i32, i32) {
    %c0_i32 = arith.constant 0 : i32
    %c0_i32_0 = arith.constant 0 : i32
    %c0_i32_1 = arith.constant 0 : i32
    return %c0_i32, %c0_i32_0 : i32, i32
  }
  func.func @transform_4(%arg0: i32, %arg1: i32) -> (i32, i32) {
    %c0_i32 = arith.constant 0 : i32
    %c0_i32_0 = arith.constant 0 : i32
    %c0_i32_1 = arith.constant 0 : i32
    return %c0_i32, %c0_i32_0 : i32, i32
  }
  func.func @transform_5(%arg0: i32, %arg1: i32) -> (i32, i32) {
    %c0_i32 = arith.constant 0 : i32
    %c0_i32_0 = arith.constant 0 : i32
    %c0_i32_1 = arith.constant 0 : i32
    return %c0_i32, %c0_i32_0 : i32, i32
  }
  func.func @transform_6(%arg0: i32, %arg1: i32) -> (i32, i32) {
    %c0_i32 = arith.constant 0 : i32
    %c0_i32_0 = arith.constant 0 : i32
    %c0_i32_1 = arith.constant 0 : i32
    return %c0_i32, %c0_i32_0 : i32, i32
  }
  func.func @transform_7(%arg0: i32, %arg1: i32) -> (i32, i32) {
    %c0_i32 = arith.constant 0 : i32
    %c0_i32_0 = arith.constant 0 : i32
    %c0_i32_1 = arith.constant 0 : i32
    return %c0_i32, %c0_i32_0 : i32, i32
  }
  func.func @transform_8(%arg0: i32, %arg1: i32) -> (i32, i32) {
    %c0_i32 = arith.constant 0 : i32
    %c0_i32_0 = arith.constant 0 : i32
    %c0_i32_1 = arith.constant 0 : i32
    return %c0_i32, %c0_i32_0 : i32, i32
  }
  func.func @transform_9(%arg0: i32, %arg1: i32) -> (i32, i32) {
    %c0_i32 = arith.constant 0 : i32
    %c0_i32_0 = arith.constant 0 : i32
    %c0_i32_1 = arith.constant 0 : i32
    return %c0_i32, %c0_i32_0 : i32, i32
  }
  func.func @transform_10(%arg0: i32, %arg1: i32) -> (i32, i32) {
    %c0_i32 = arith.constant 0 : i32
    %c0_i32_0 = arith.constant 0 : i32
    %c0_i32_1 = arith.constant 0 : i32
    return %c0_i32, %c0_i32_0 : i32, i32
  }
  func.func @transform_11(%arg0: i32, %arg1: i32) -> (i32, i32) {
    %c0_i32 = arith.constant 0 : i32
    %c0_i32_0 = arith.constant 0 : i32
    %c0_i32_1 = arith.constant 0 : i32
    return %c0_i32, %c0_i32_0 : i32, i32
  }
  func.func @transform_12(%arg0: i32, %arg1: i32) -> (i32, i32) {
    %c0_i32 = arith.constant 0 : i32
    %c0_i32_0 = arith.constant 0 : i32
    %c0_i32_1 = arith.constant 0 : i32
    return %c0_i32, %c0_i32_0 : i32, i32
  }
  func.func @transform_13(%arg0: i32, %arg1: i32) -> (i32, i32) {
    %c0_i32 = arith.constant 0 : i32
    %c0_i32_0 = arith.constant 0 : i32
    %c0_i32_1 = arith.constant 0 : i32
    return %c0_i32, %c0_i32_0 : i32, i32
  }
  func.func @transform_14(%arg0: i32, %arg1: i32) -> (i32, i32) {
    %c0_i32 = arith.constant 0 : i32
    %c0_i32_0 = arith.constant 0 : i32
    %c0_i32_1 = arith.constant 0 : i32
    return %c0_i32, %c0_i32_0 : i32, i32
  }
  func.func @transform_15(%arg0: i32, %arg1: i32) -> (i32, i32, i32) {
    %c0_i32 = arith.constant 0 : i32
    %c0_i32_0 = arith.constant 0 : i32
    %c0_i32_1 = arith.constant 0 : i32
    return %arg0, %c0_i32, %c0_i32_0 : i32, i32, i32
  }
}

</mosaic_0001>

<bundles_post_ra>
// kernel: io_b_forward.1
= control target key start
LH: loop header
LB: loop body
LE: loop exit
PB: predicated region body
PF: predicated region fallthrough
CT: control target
= control target key end

     0   :  { %s1900_s0 = inlined_call_operand.vmem [shape: f32[2,16,4], index: 0, kind: input, shape index: {}]   ;;  %s1901_s1 = inlined_call_operand.vmem [shape: f32[2,1,4], index: 1, kind: input, shape index: {}]   ;;  %s1902_s2 = inlined_call_operand.vmem [shape: f32[1,1,16], index: 2, kind: input, shape index: {}]   ;;  %s1903_s3 = inlined_call_operand.vmem [shape: f32[4,32], index: 3, kind: input, shape index: {}]   ;;  %s1904_s4 = inlined_call_operand.vmem [shape: f32[4,32], index: 4, kind: input, shape index: {}]   ;;  %s1905_s5 = inlined_call_operand.vmem [shape: f32[1,32], index: 5, kind: input, shape index: {}]   ;;  %s1906_s6 = inlined_call_operand.vmem [shape: f32[32,32], index: 6, kind: input, shape index: {}]   ;;  %s1907_s7 = inlined_call_operand.vmem [shape: f32[1,32], index: 7, kind: input, shape index: {}]   ;;  %s1908_s8 = inlined_call_operand.vmem [shape: f32[32,32], index: 8, kind: input, shape index: {}]   ;;  %s1909_s9 = inlined_call_operand.vmem [shape: f32[1,32], index: 9, kind: input, shape index: {}]   ;;  %s1910_s10 = inlined_call_operand.vmem [shape: f32[32,32], index: 10, kind: input, shape index: {}]   ;;  %s1911_s11 = inlined_call_operand.vmem [shape: f32[1,32], index: 11, kind: input, shape index: {}]   ;;  %s1912_s12 = inlined_call_operand.vmem [shape: f32[4,4], index: 12, kind: input, shape index: {}]   ;;  %s1913_s13 = inlined_call_operand.vmem [shape: f32[32,4], index: 13, kind: input, shape index: {}]   ;;  %s1914_s14 = inlined_call_operand.vmem [shape: f32[1,4], index: 14, kind: input, shape index: {}]   ;;  %s1915_s15 = inlined_call_operand.hbm [shape: f32[2,1,4], index: 15, kind: output, shape index: {}]  }
   0x1   :  { %1917 = sst [smem:[#allocation8_spill]] %s1900_s0 }
   0x2   :  { %1918 = sst [smem:[#allocation9_spill]] %s1901_s1 }
   0x3   :  { %1919 = sst [smem:[#allocation10_spill]] %s1902_s2 }
   0x4   :  { %1920 = sst [smem:[#allocation11_spill]] %s1903_s3 }
   0x5   :  { %1921 = sst [smem:[#allocation12_spill]] %s1904_s4 }
   0x6   :  { %1922 = sst [smem:[#allocation13_spill]] %s1905_s5 }
   0x7   :  { %20 = vsyncpa [#allocation5], 0 }
   0x8   :  { %22 = vsyncpa [#allocation5 + $0x1], 0  ;;  %s1674_s18 = smov 0   ;;  %s1676_s19 = smov 0  }
   0x9   :  { %s1678_s20 = smov 0   ;;  %s1680_s21 = smov 0  }
   0xa   :  { %s1682_s22 = smov 0   ;;  %s1684_s23 = smov 0  }
   0xb LB: > { %s1332_s24 = sadd.s32 4294967295, %s1589_s23   ;;  %s1333_s25 = sadd.s32 4294967294, %s1589_s23   ;;  %s1589_s23 = sphi %s1684_s23, %s28_s23   ;;  %s1585_s22 = sphi %s1682_s22, %s1937_s22   ;;  %s1581_s21 = sphi %s1680_s21, %s1936_s21   ;;  %s1577_s20 = sphi %s1678_s20, %s1935_s20   ;;  %s1573_s19 = sphi %s1676_s19, %s1934_s19   ;;  %s1569_s18 = sphi %s1674_s18, %s1933_s18  }
   0xc   : > { %s40_s26 = sadd.s32 1, %s1585_s22  ;;  %s379_s27 = sadd.s32 1, %s1577_s20 }
   0xd   : > { %p42_p0 = scmp.ge.s32.totalorder %s40_s26, 2  ;;  %p389_p1 = scmp.ne.s32.totalorder %s1577_s20, %s1573_s19 }
   0xe   : > { %p390_p2 = scmp.eq.s32.totalorder %s1332_s24, 1  ;;  %p395_p3 = scmp.ne.s32.totalorder %s1573_s19, %s1569_s18 }
   0xf   : > { %s1939_s26 = smov (%p42_p0, %s40_s26), 0  ;;  %p396_p5 = scmp.eq.s32.totalorder %s1333_s25, 1 }
  0x10   : > { %1923 = sst [smem:[#allocation7_spill]] %s1939_s26  ;;  %p1714_p4 = por %p390_p2, %p389_p1 }
  0x11   : > { %s376_s29 = ssub.s32 %s1585_s22, %s1939_s26  ;;  %p1337_p6 = scmp.ge.s32.totalorder %s1589_s23, 1 }
  0x12   : > { %p377_p7 = scmp.eq.s32.totalorder %s376_s29, 0  ;;  %p1721_p8 = por %p396_p5, %p395_p3 }
  0x13   : > { %p475_p9 = scmp.lt.s32.totalorder %s1589_s23, 3 }
  0x14   : > { %s1727_s16 = scalar_select %p377_p7, %s1577_s20, %s379_s27  }
  0x15   : > { %p476_p10 = pnand %p1337_p6, %p475_p9 }
  0x16   : > { %s1926_s4 = sld [smem:[#allocation12_spill]] (!%p476_p10)  ;;  %p533_p11 = scmp.lt.s32.totalorder (!%p476_p10), %s1581_s21, 1 }
  0x17   : > { %479 = sbr.rel (%p476_p10) target bundleno = 1247 (0x4df), region = 80  ;;  %s1927_s3 = sld [smem:[#allocation11_spill]] (!%p476_p10) }
  0x18   : > { %s1928_s1 = sld [smem:[#allocation9_spill]] (!%p476_p10)  ;;  %s1355_s25 = sshll.u32 (!%p476_p10), %s1581_s21, 4 }
  0x19   : > { %s1929_s0 = sld [smem:[#allocation8_spill]] (!%p476_p10)  ;;  %s1593_s24 = smov (!%p476_p10), [#allocation4]  }
  0x1a   : > { %s1930_s5 = sld [smem:[#allocation13_spill]] (!%p476_p10) }
  0x1b   : > { %s1931_s2 = sld [smem:[#allocation10_spill]] (!%p476_p10) }
  0x1c   : > { %v553_v0 = vld [vmem:[%s1926_s4] sm:$0xf]  ;;  %vm559_vm0 = vcmask 1043456   ;;  %v1591_v1 = vmov 0.0   ;;  %vm1592_vm1 = vmmov 0   ;;  %s534_s29 = scalar_select %p533_p11, %s1581_s21, 1 }
  0x1d   : > { %1390 = vmatprep.subr.mxu0 %v1591_v1  ;;  %1392 = vmatprep.mubr.msk.f32.mxu0 %vm1592_vm1, %v1591_v1  ;;  %v638_v2 = vld [vmem:[%s1927_s3] sm:$0xf]  ;;  %vm555_vm2 = vcmask 31744   ;;  %vm633_vm3 = vcmask 253952   ;;  %v737_v6 = vld [vmem:[%s1906_s6 + $0x18] sm:$0xff]  ;;  %v736_v7 = vld [vmem:[%s1906_s6 + $0x10] sm:$0xff] }
  0x1e   : > { %1391 = vmatpush3.msk.msra.mxu0 %vm559_vm0, %v553_v0  ;;  %1395 = vmatprep.subr.msk.mxu1 %vm559_vm0, %v638_v2  ;;  %s1746_s4 = scalar_lea.vmem %s1928_s1, %s534_s29  ;;  %s1358_s26 = sshll.u32 %s534_s29, 4  ;;  %635 = vst.msk [vmem:[#allocation3] sm:$0x1] %vm633_vm3, %v1591_v1  ;;  %v735_v8 = vld [vmem:[%s1906_s6 + $0x8] sm:$0xff]  ;;  %v734_v9 = vld [vmem:[%s1906_s6] sm:$0xff]  ;;  %vm745_vm4 = vcmask 261120  }
  0x1f   : > { %1396 = vmatpush3.msk.msra.mxu1 %vm559_vm0, %v638_v2  ;;  %v552_v3 = vld [vmem:[%s1746_s4] sm:$0x1]  ;;  %s540_s3 = scalar_lea.vmem %s1929_s0, %s1358_s26  ;;  %1400 = vmatprep.subr.mxu0 %v737_v6  ;;  %vm831_vm5 = vcmask 130048   ;;  %v915_v29 = vld [vmem:[%s1908_s8 + $0x18] sm:$0xff]  ;;  %v914_v30 = vld [vmem:[%s1908_s8 + $0x10] sm:$0xff]  ;;  %s530_s26 = sand.u32 1, %s1573_s19  }
  0x20   : > { %1411 = vmatprep.subr.mxu1 %v1591_v1  ;;  %1393 = vmatmul.mubr.msk.f32.vlgmr.msra.gmra.mxu0 %vm555_vm2, %v552_v3  ;;  %v636_v4 = vld [vmem:[%s540_s3] sm:$0xff]  ;;  %v637_v5 = vld [vmem:[%s540_s3 + $0x8] sm:$0xff]  ;;  %v994_v33 = vld [vmem:[%s1910_s10 + $0x18] sm:$0xff]  ;;  %s531_s27 = scalar_lea.vmem [#allocation4], %s530_s26  ;;  %vm1227_vm6 = vcmask 24576   ;;  %s1240_s0 = scalar_lea.hbm %s1915_s15, %s1355_s25 }
  0x21   : > { %1397 = vmatprep.mubr.msk.f32.mxu1 %vm555_vm2, %v636_v4  ;;  %1401 = vmatpush3.msra.mxu0 %v737_v6  ;;  %v554_v10 = vld [vmem:[%s1930_s5] sm:$0x1]  ;;  %v913_v31 = vld [vmem:[%s1908_s8 + $0x8] sm:$0xff]  ;;  %v993_v39 = vld [vmem:[%s1910_s10 + $0x10] sm:$0xff]  ;;  %s1242_s29 = sshll.u32 %s531_s27, 4  ;;  %s1230_s1 = scalar_lea.sflag [#allocation5], %s530_s26  ;;  %s1243_s29 = int_to_ptr.vmem [resolvable:$true] %s1242_s29 }
  0x22   : > { %1398 = vmatmul.mubr.msk.f32.vlgmr.msra.gmra.mxu1 %vm555_vm2, %v637_v5  ;;  %1402 = vmatprep.subr.mxu0 %v736_v7  ;;  %v1346_v21 = vld [vmem:[%s1907_s7] ss:$0 sm:$0xff]  ;;  %v992_v40 = vld [vmem:[%s1910_s10 + $0x8] sm:$0xff]  ;;  %v1075_v42 = vld [vmem:[%s1913_s13 + $0x18] sm:$0xff]  ;;  %s1517_s21 = sshll.u32 %s1593_s24, 4  ;;  %s1518_s21 = int_to_ptr.vmem [resolvable:$false] %s1517_s21 }
  0x23   : > { %1415 = vmatprep.mubr.msk.f32.mxu1 %vm1592_vm1, %v1591_v1  ;;  %1403 = vmatpush3.msra.mxu0 %v736_v7  ;;  %v830_v28 = vld [vmem:[%s1931_s2] sm:$0x1]  ;;  %v1074_v48 = vld [vmem:[%s1913_s13 + $0x10] sm:$0xff]  ;;  %v1073_v50 = vld [vmem:[%s1913_s13 + $0x8] sm:$0xff]  ;;  %s1513_s2 = scalar_lea.vmem %s1243_s29, 16  ;;  %s1519_s3 = scalar_lea.vmem %s1518_s21, 32 }
  0x24   : > { %1404 = vmatprep.subr.mxu0 %v735_v8  ;;  %v912_v32 = vld [vmem:[%s1908_s8] sm:$0xff]  ;;  %p1514_p12 = scmp.ne.s32.totalorder %s1243_s29, %s1513_s2  ;;  %p1520_p1 = scmp.lt.s32.totalorder %s1243_s29, %s1518_s21 }
  0x25   : > { %1405 = vmatpush3.msra.mxu0 %v735_v8  ;;  %v829_v34 = vld [vmem:[#allocation3] sm:$0x1]  ;;  %v916_v43 = vld [vmem:[%s1909_s9] sm:$0x1]  ;;  %p1521_p2 = scmp.lt.s32.totalorder %s1519_s3, %s1513_s2 }
  0x26   : > { %1406 = vmatprep.subr.mxu0 %v734_v9  ;;  %v991_v41 = vld [vmem:[%s1910_s10] sm:$0xff]  ;;  %p1515_p13 = pnand %p1514_p12, %p1714_p4 }
  0x27   : > { %1407 = vmatpush3.msra.mxu0 %v734_v9  ;;  %v1070_v49 = vld [vmem:[%s1746_s4] sm:$0x1]  ;;  %p1522_p3 = por %p1521_p2, %p1520_p1 }
  0x28   : > { %1429 = vmatprep.subr.mxu0 %v1591_v1  ;;  %v1071_v51 = vld [vmem:[%s1912_s12] sm:$0xf]  ;;  %p1516_p0 = pneg %p1515_p13 }
  0x29   : > { %v1072_v52 = vld [vmem:[%s1913_s13] sm:$0xff] }
  0x2a   : > { %v995_v53 = vld [vmem:[%s1911_s11] sm:$0x1]  ;;  %p1523_p5 = pnand %p1522_p3, %p1516_p0 }
  0x2b   : > { %v1225_v61 = vld [vmem:[%s1914_s14] sm:$0x1] }
  0xe0   : > { %v629_v11 = vpop.f32.mrf.mxu0 }
  0xe1   : > { %v630_v12 = vadd.f32 %v629_v11, %v554_v10 }
  0xe2   : > { %v1394_v13 = vpop.f32.mrf.mxu0  ;;  %v1399_v14 = vpop.f32.mrf.mxu1 }
  0xe3   : > { %634 = vst.msk [vmem:[#allocation2] sm:$0x1] %vm633_vm3, %v630_v12 }
  0xe4   : > { %v723_v16 = vpop.f32.mrf.mxu1 }
  0xea   : > { %v1342_v15 = vld [vmem:[#allocation2] ss:$0 sm:$0xff] }
  0xeb   : > { %v729_v17 = vadd.f32 %v1399_v14, %v1342_v15  ;;  %v724_v18 = vadd.f32 %v1342_v15, %v723_v16 }
  0xed   : > { %v733_v19 = vmax.f32 %v729_v17, 0.0  ;;  %v732_v20 = vmax.f32 %v724_v18, 0.0 }
  0xef   : > { %1408 = vmatprep.mubr.msk.f32.mxu0 %vm745_vm4, %v732_v20 }
  0xf0   : > { %1409 = vmatmul.mubr.msk.f32.vlgmr.msra.gmra.mxu0 %vm745_vm4, %v733_v19 }
  0xf1   : > { %1437 = vmatprep.mubr.msk.f32.mxu0 %vm1592_vm1, %v1591_v1  ;;  %1430 = vmatpush3.msra.mxu0 %v994_v33 }
  0xf2   : > { %1431 = vmatprep.subr.mxu0 %v1591_v1 }
  0xf3   : > { %1432 = vmatpush3.msra.mxu0 %v993_v39 }
  0xf4   : > { %1433 = vmatprep.subr.mxu0 %v1591_v1 }
  0xf5   : > { %1434 = vmatpush3.msra.mxu0 %v992_v40 }
  0xf6   : > { %1435 = vmatprep.subr.mxu0 %v1591_v1 }
  0xf7   : > { %1436 = vmatpush3.msra.mxu0 %v991_v41 }
  0xf8   : > { %1451 = vmatprep.subr.mxu0 %v1591_v1 }
 0x1b0   : > { %v1410_v22 = vpop.f32.mrf.mxu0 }
 0x1b1   : > { %v824_v23 = vadd.f32 %v1410_v22, %v1346_v21 }
 0x1b2   : > { %v818_v24 = vpop.f32.mrf.mxu0 }
 0x1b3   : > { %v828_v25 = vmax.f32 %v824_v23, 0.0  ;;  %v819_v26 = vadd.f32 %v1346_v21, %v818_v24 }
 0x1b5   : > { %v827_v27 = vmax.f32 %v819_v26, 0.0  ;;  %1412 = vmatpush3.msra.mxu1 %v828_v25 }
 0x1b6   : > { %1413 = vmatprep.subr.mxu1 %v1591_v1 }
 0x1b7   : > { %1414 = vmatpush3.msra.mxu1 %v827_v27 }
 0x1b8   : > { %1416 = vmatmul.mubr.msk.f32.vlgmr.msra.gmra.mxu1 %vm831_vm5, %v830_v28  ;;  %1418 = vmatprep.subr.mxu1 %v1591_v1 }
 0x1b9   : > { %1426 = vmatprep.mubr.msk.f32.mxu1 %vm1592_vm1, %v1591_v1  ;;  %1419 = vmatpush3.msra.mxu1 %v915_v29 }
 0x1ba   : > { %1420 = vmatprep.subr.mxu1 %v1591_v1 }
 0x1bb   : > { %1421 = vmatpush3.msra.mxu1 %v914_v30 }
 0x1bc   : > { %1422 = vmatprep.subr.mxu1 %v1591_v1 }
 0x1bd   : > { %1423 = vmatpush3.msra.mxu1 %v913_v31 }
 0x1be   : > { %1424 = vmatprep.subr.mxu1 %v1591_v1 }
 0x1bf   : > { %1425 = vmatpush3.msra.mxu1 %v912_v32 }
 0x1c0   : > { %1440 = vmatprep.subr.mxu1 %v1591_v1 }
 0x278   : > { %v901_v35 = vpop.f32.mrf.mxu1 }
 0x279   : > { %v905_v36 = vadd.f32 %v901_v35, %v829_v34 }
 0x27a   : > { %v1417_v37 = vpop.f32.mrf.mxu1 }
 0x27b   : > { %907 = vst.msk [vmem:[#allocation3] sm:$0x1] %vm633_vm3, %v905_v36 }
 0x282   : > { %v911_v38 = vld [vmem:[#allocation3] sm:$0x1] }
 0x283   : > { %1427 = vmatmul.mubr.msk.f32.vlgmr.msra.gmra.mxu1 %vm745_vm4, %v911_v38 }
 0x284   : > { %1448 = vmatprep.mubr.msk.f32.mxu1 %vm1592_vm1, %v1591_v1  ;;  %1441 = vmatpush3.msra.mxu1 %v1075_v42 }
 0x285   : > { %1442 = vmatprep.subr.mxu1 %v1591_v1 }
 0x286   : > { %1443 = vmatpush3.msra.mxu1 %v1074_v48 }
 0x287   : > { %1444 = vmatprep.subr.mxu1 %v1591_v1 }
 0x288   : > { %1445 = vmatpush3.msra.mxu1 %v1073_v50 }
 0x289   : > { %1446 = vmatprep.subr.mxu1 %v1591_v1 }
 0x28a   : > { %1447 = vmatpush3.msra.mxu1 %v1072_v52 }
 0x343   : > { %v986_v44 = vpop.f32.mrf.mxu1 }
 0x344   : > { %v987_v45 = vadd.f32 %v986_v44, %v916_v43 }
 0x345   : > { %v1428_v46 = vpop.f32.mrf.mxu1 }
 0x346   : > { %v990_v47 = vmax.f32 %v987_v45, 0.0 }
 0x348   : > { %1438 = vmatmul.mubr.msk.f32.vlgmr.msra.gmra.mxu0 %vm745_vm4, %v990_v47 }
 0x349   : > { %1453 = vmatprep.mubr.msk.f32.mxu0 %vm1592_vm1, %v1591_v1  ;;  %1452 = vmatpush3.msk.msra.mxu0 %vm559_vm0, %v1071_v51 }
 0x34c   : > { %1454 = vmatmul.mubr.msk.f32.vlgmr.msra.gmra.mxu0 %vm555_vm2, %v1070_v49 }
 0x408   : > { %v1065_v54 = vpop.f32.mrf.mxu0 }
 0x409   : > { %v1066_v55 = vadd.f32 %v1065_v54, %v995_v53 }
 0x40a   : > { %v1439_v56 = vpop.f32.mrf.mxu0 }
 0x40b   : > { %v1069_v57 = vmax.f32 %v1066_v55, 0.0 }
 0x40c   : > { %v1221_v58 = vpop.f32.mrf.mxu0 }
 0x40d   : > { %1449 = vmatmul.mubr.msk.f32.vlgmr.msra.gmra.mxu1 %vm745_vm4, %v1069_v57 }
 0x40e   : > { %v1455_v59 = vpop.f32.mrf.mxu0 }
 0x4cd   : > { %v1145_v60 = vpop.f32.mrf.mxu1 }
 0x4ce   : > { %v1222_v62 = vadd.f32 %v1221_v58, %v1145_v60 }
 0x4cf   : > { %v1450_v63 = vpop.f32.mrf.mxu1 }
 0x4d0   : > { %v1226_v0 = vadd.f32 %v1225_v61, %v1222_v62 }
 0x4d2   : > { %1228 = vst.msk [vmem:[%s531_s27] sm:$0x1] %vm1227_vm6, %v1226_v0 }
 0x4d3   : > { %1526 = shalt.err (!%p1523_p5)
}
 0x4d4   : > { %s1527_s5 = scalar_lea.hbm %s1240_s0, 16  ;;  %s1531_s27 = scalar_lea.hbm %s1915_s15, 32 }
 0x4d5   : > { %p1528_p6 = scmp.ne.s32.totalorder %s1240_s0, %s1527_s5  ;;  %p1532_p10 = scmp.lt.s32.totalorder %s1240_s0, %s1915_s15 }
 0x4d6   : > { %p1533_p11 = scmp.lt.s32.totalorder %s1531_s27, %s1527_s5 }
 0x4d7   : > { %p1529_p7 = pnand %p1528_p6, %p1714_p4 }
 0x4d8   : > { %p1534_p12 = por %p1533_p11, %p1532_p10 }
 0x4d9   : > { %p1530_p9 = pneg %p1529_p7 }
 0x4db   : > { %p1535_p13 = pnand %p1534_p12, %p1530_p9 }
 0x4dd   : > { %1538 = shalt.err (!%p1535_p13)
}
 0x4de   : > { %1456 = dma.vmem_to_hbm [thread:$0]  (%p1714_p4), %s1243_s29, 16, %s1240_s0, %s1230_s1  }
 0x4df PF: > { %p1462_p0 = scmp.ge.s32.totalorder %s1589_s23, 2  ;;  %s1254_s2 = sand.u32 1, %s1569_s18  }
 0x4e0   : > { %s1255_s24 = scalar_lea.sflag [#allocation5], %s1254_s2 }
 0x4e1   : > { %p1459_p1 = pnand %p1462_p0, %p1721_p8 }
 0x4e3   : > { %p1460_p2 = pneg %p1459_p1 }
 0x4e5   : > { %1564 = dma.done.wait (%p1460_p2), %s1255_s24, 16  }
 0x4e6   : > { %1566 = vsyncadd (%p1460_p2), %s1255_s24, 4294967280  ;;  %s28_s23 = sadd.s32 1, %s1589_s23   ;;  %s1932_s1 = sld [smem:[#allocation7_spill]] }
 0x4e7   : > { %p25_p3 = scmp.ge.s32.totalorder %s28_s23, 4   ;;  %s1933_s18 = smov %s1573_s19 }
 0x4e8   : > { %s1934_s19 = smov %s1577_s20  ;;  %s1935_s20 = smov %s1727_s16 }
 0x4e9   : > { %s1936_s21 = smov %s1585_s22  ;;  %27 = sbr.rel (!%p25_p3) target bundleno = 11 (0xb), region = 129 }
 0x4ec   : > { %s1937_s22 = smov %s1932_s1 }
 0x4ee   :  { %1259 = vsyncpa [#allocation5], 1 }
 0x4ef   :  { %1261 = vsyncpa [#allocation5 + $0x1], 1 }

</bundles_post_ra>
